<compile_context>
chip_gen: v5e
topology: v5e:2x2
jax: 0.10.0
libtpu: 0.0.40
codegen_flags: <defaults>
</compile_context>

<pallas_src>
import jax
import jax.numpy as jnp
from jax.experimental import pallas as pl
from jax.experimental.pallas import tpu as pltpu

_LANE = 512                    # lane-dense last dim (multiple of 128 -> wide DMAs)
_SUB = 8                       # sublane height of the per-slice accumulator
_P = 2                         # megacore split (2x on v7x, harmless on v5e/v6e)
_MAX_TILE_ELEMS = 1024 * 512   # ~2 MiB f32 per input tile; 2 in x 2 buf = 8 MiB VMEM


def _bce_kernel(logit_ref, target_ref, acc_ref):
    i = pl.program_id(1)

    @pl.when(i == 0)
    def _():
        acc_ref[...] = jnp.zeros_like(acc_ref)

    x = logit_ref[...].astype(jnp.float32)
    y = target_ref[...].astype(jnp.float32)   # narrow->f32 cast happens in-kernel
    # Numerically stable BCE-with-logits: max(x,0) - x*y + log1p(exp(-|x|)).
    loss = jnp.maximum(x, 0.0) - x * y + jnp.log1p(jnp.exp(-jnp.abs(x)))
    # Fold the (block_rows, LANE) tile into one vreg-shaped (8, LANE) partial
    # with plain VPU adds (no per-step scalar/XLU reduction, no (1,1) store);
    # the one cross-lane reduction happens in the wrapper.
    sub, lane = acc_ref.shape
    acc_ref[...] += loss.reshape(-1, sub, lane).sum(axis=0)


def bce_loss(logit, target, reduce=False):
    """Pallas equivalent of BCELoss(reduce=...).forward(logit, target).

    The PyTorch module applies nn.BCEWithLogitsLoss() (default mean
    reduction), which already yields a scalar; therefore both reduce=False
    and reduce=True return that same scalar mean.
    """
    assert logit.shape == target.shape
    total = logit.size

    x_flat = logit.reshape(-1)
    # Do NOT upcast the target in the wrapper: keep its (possibly narrow)
    # dtype on the HBM->VMEM path; the kernel casts to f32.
    y_flat = target.reshape(-1)
    if y_flat.dtype == jnp.bool_:
        y_flat = y_flat.astype(jnp.int8)

    # Pad the flat length to a multiple of (P * 8 * LANE).  Padded elements
    # use (x=+200, y=1): max(200,0) - 200*1 + log1p(exp(-200)) == 0.0 exactly
    # in f32 (exp underflows), so padding contributes nothing to the sum.
    chunk = _P * _SUB * _LANE
    padded = ((total + chunk - 1) // chunk) * chunk
    pad = padded - total
    if pad:
        x_flat = jnp.concatenate(
            [x_flat, jnp.full((pad,), 200.0, dtype=x_flat.dtype)])
        y_flat = jnp.concatenate(
            [y_flat, jnp.ones((pad,), dtype=y_flat.dtype)])

    rows = padded // _LANE           # multiple of _P * _SUB
    rows_per_p = rows // _P          # multiple of _SUB
    x2 = x_flat.reshape(rows, _LANE)
    y2 = y_flat.reshape(rows, _LANE)

    # Largest multiple-of-8 row tile that divides rows_per_p, capped so the
    # double-buffered f32 tile pair stays inside default scoped VMEM on all
    # of v5e/v6e/v7x.  Always a multiple of 8 -> satisfies (8,128) BlockSpec.
    cap = min(rows_per_p, _MAX_TILE_ELEMS // _LANE)
    block_rows = (cap // _SUB) * _SUB
    while block_rows > _SUB and rows_per_p % block_rows != 0:
        block_rows -= _SUB
    blocks_per_p = rows_per_p // block_rows

    in_map = lambda p, i: (p * blocks_per_p + i, 0)
    bytes_accessed = (x2.size * x2.dtype.itemsize
                      + y2.size * y2.dtype.itemsize
                      + _P * _SUB * _LANE * 4)

    partials = pl.pallas_call(
        _bce_kernel,
        out_shape=jax.ShapeDtypeStruct((_P * _SUB, _LANE), jnp.float32),
        grid_spec=pltpu.PrefetchScalarGridSpec(
            num_scalar_prefetch=0,
            grid=(_P, blocks_per_p),
            in_specs=[
                pl.BlockSpec((block_rows, _LANE), in_map),
                pl.BlockSpec((block_rows, _LANE), in_map),
            ],
            # Per-parallel-slice resident accumulator block; written back to
            # HBM only when the parallel index changes (end of its slice).
            out_specs=pl.BlockSpec((_SUB, _LANE), lambda p, i: (p, 0)),
        ),
        compiler_params=pltpu.CompilerParams(
            dimension_semantics=("parallel", "arbitrary"),
        ),
        cost_estimate=pl.CostEstimate(
            flops=6 * padded,
            transcendentals=2 * padded,
            bytes_accessed=bytes_accessed,
        ),
    )(x2, y2)

    # Single cross-lane/sublane reduce + mean, once, over a tiny array.
    loss = partials.sum() / jnp.float32(total)
    if not reduce:
        return loss
    return loss  # mean() of a scalar is itself


if __name__ == "__main__":
    key = jax.random.PRNGKey(0)
    k1, k2 = jax.random.split(key)
    B, C, H, W = 2, 4, 16, 16  # NCHW, like the PyTorch module's inputs
    logit = jax.random.normal(k1, (B, C, H, W), dtype=jnp.float32)
    target = (jax.random.uniform(k2, (B, C, H, W)) > 0.5).astype(jnp.float32)

    loss = bce_loss(logit, target, reduce=False)
    jax.block_until_ready(loss)

    # Reference check in plain JAX (same stable formula, mean over all elems).
    x = logit.astype(jnp.float32)
    y = target.astype(jnp.float32)
    ref = jnp.mean(jnp.maximum(x, 0.0) - x * y + jnp.log1p(jnp.exp(-jnp.abs(x))))
    assert jnp.allclose(loss, ref, atol=1e-5, rtol=1e-5), (loss, ref)

    # Both module branches return the same scalar (BCEWithLogitsLoss already
    # mean-reduces), mirror that here.
    loss_r = bce_loss(logit, target, reduce=True)
    jax.block_until_ready(loss_r)
    assert jnp.allclose(loss_r, ref, atol=1e-5, rtol=1e-5), (loss_r, ref)

    print("KERNEL_OK")
</pallas_src>

<mosaic_0001>
module attributes {stable_mosaic.version = 11 : i64} {
  func.func @_bce_kernel(%arg0: i32, %arg1: i32, %arg2: memref<8x512xf32, #tpu.memory_space<vmem>>, %arg3: memref<8x512xf32, #tpu.memory_space<vmem>>, %arg4: memref<8x512xf32, #tpu.memory_space<vmem>>) attributes {dimension_semantics = [#tpu.dimension_semantics<parallel>, #tpu.dimension_semantics<arbitrary>], iteration_bounds = array<i64: 2, 1>, scalar_prefetch = 0 : i64, scratch_operands = 0 : i64, tpu.core_type = #tpu.core_type<tc>, window_params = [{transform_indices = @transform_0, window_bounds = array<i64: 8, 512>}, {transform_indices = @transform_1, window_bounds = array<i64: 8, 512>}, {transform_indices = @transform_2, window_bounds = array<i64: 8, 512>}]} {
    %c0_i32 = arith.constant 0 : i32
    %0 = arith.cmpi eq, %arg1, %c0_i32 : i32
    %1 = arith.extui %0 : i1 to i32
    %c0_i32_0 = arith.constant 0 : i32
    %2 = arith.cmpi ne, %1, %c0_i32_0 : i32
    scf.if %2 {
      %cst_10 = arith.constant 0.000000e+00 : f32
      %20 = vector.broadcast %cst_10 : f32 to vector<8x512xf32>
      %c0_11 = arith.constant 0 : index
      %c0_12 = arith.constant 0 : index
      %21 = vector.load %arg4[%c0_11, %c0_12] : memref<8x512xf32, #tpu.memory_space<vmem>>, vector<8x512xf32>
      tpu.vector_store %arg4[%c0_11, %c0_12], %20 {strides = array<i32>} : memref<8x512xf32, #tpu.memory_space<vmem>>, vector<8x512xf32>,
    } else {
    }
    %c0 = arith.constant 0 : index
    %c0_1 = arith.constant 0 : index
    %3 = vector.load %arg2[%c0, %c0_1] : memref<8x512xf32, #tpu.memory_space<vmem>>, vector<8x512xf32>
    %c0_2 = arith.constant 0 : index
    %c0_3 = arith.constant 0 : index
    %4 = vector.load %arg3[%c0_2, %c0_3] : memref<8x512xf32, #tpu.memory_space<vmem>>, vector<8x512xf32>
    %cst = arith.constant 0.000000e+00 : f32
    %5 = vector.broadcast %cst : f32 to vector<8x512xf32>
    %6 = arith.maximumf %3, %5 : vector<8x512xf32>
    %7 = arith.mulf %3, %4 : vector<8x512xf32>
    %8 = arith.subf %6, %7 : vector<8x512xf32>
    %9 = math.absf %3 : vector<8x512xf32>
    %cst_4 = arith.constant 0.000000e+00 : f32
    %10 = vector.broadcast %cst_4 : f32 to vector<8x512xf32>
    %11 = arith.subf %10, %9 : vector<8x512xf32>
    %12 = math.exp %11 : vector<8x512xf32>
    %13 = math.log1p %12 : vector<8x512xf32>
    %14 = arith.addf %8, %13 : vector<8x512xf32>
    %c0_5 = arith.constant 0 : index
    %c0_6 = arith.constant 0 : index
    %15 = vector.load %arg4[%c0_5, %c0_6] : memref<8x512xf32, #tpu.memory_space<vmem>>, vector<8x512xf32>
    %16 = vector.shape_cast %14 : vector<8x512xf32> to vector<1x8x512xf32>
    %cst_7 = arith.constant dense<0.000000e+00> : vector<8x512xf32>
    %17 = vector.multi_reduction <add>, %16, %cst_7 [0] : vector<1x8x512xf32> to vector<8x512xf32>
    %18 = arith.addf %15, %17 : vector<8x512xf32>
    %c0_8 = arith.constant 0 : index
    %c0_9 = arith.constant 0 : index
    %19 = vector.load %arg4[%c0_8, %c0_9] : memref<8x512xf32, #tpu.memory_space<vmem>>, vector<8x512xf32>
    tpu.vector_store %arg4[%c0_8, %c0_9], %18 {strides = array<i32>} : memref<8x512xf32, #tpu.memory_space<vmem>>, vector<8x512xf32>,
    return
  }
  func.func @transform_0(%arg0: i32, %arg1: i32) -> (i32, i32) {
    %c1_i32 = arith.constant 1 : i32
    %0 = arith.muli %arg0, %c1_i32 : i32
    %1 = arith.addi %0, %arg1 : i32
    %c0_i32 = arith.constant 0 : i32
    %c0_i32_0 = arith.constant 0 : i32
    return %1, %c0_i32 : i32, i32
  }
  func.func @transform_1(%arg0: i32, %arg1: i32) -> (i32, i32) {
    %c1_i32 = arith.constant 1 : i32
    %0 = arith.muli %arg0, %c1_i32 : i32
    %1 = arith.addi %0, %arg1 : i32
    %c0_i32 = arith.constant 0 : i32
    %c0_i32_0 = arith.constant 0 : i32
    return %1, %c0_i32 : i32, i32
  }
  func.func @transform_2(%arg0: i32, %arg1: i32) -> (i32, i32) {
    %c0_i32 = arith.constant 0 : i32
    %c0_i32_0 = arith.constant 0 : i32
    return %arg0, %c0_i32 : i32, i32
  }
}

</mosaic_0001>

<bundles_post_ra>
// kernel: tpu_custom_call.1
= control target key start
LH: loop header
LB: loop body
LE: loop exit
PB: predicated region body
PF: predicated region fallthrough
CT: control target
= control target key end

     0   :  { %7 = vsyncpa [#allocation3], 0  ;;  %s877_s0 = inlined_call_operand.hbm [shape: f32[16,512], index: 0, kind: input, shape index: {}]   ;;  %s878_s1 = inlined_call_operand.hbm [shape: f32[16,512], index: 1, kind: input, shape index: {}]   ;;  %s879_s2 = inlined_call_operand.hbm [shape: f32[16,512], index: 2, kind: output, shape index: {}]  }
   0x1   :  { %9 = vsyncpa [#allocation3 + $0x1], 0 }
   0x2   :  { %10 = vsyncpa [#allocation6], 0 }
   0x3   :  { %12 = vsyncpa [#allocation6 + $0x1], 0 }
   0x4   :  { %13 = vsyncpa [#allocation4], 0 }
   0x5   :  { %15 = vsyncpa [#allocation4 + $0x1], 0  ;;  %s711_s9 = smov 0   ;;  %s713_s10 = smov 0  }
   0x6   :  { %s715_s11 = smov 0   ;;  %s717_s12 = smov 0  }
   0x7   :  { %s719_s13 = smov 0   ;;  %s721_s14 = smov 0  }
   0x8 LB: > { %s442_s15 = sadd.s32 4294967295, %s694_s14   ;;  %s443_s16 = sadd.s32 4294967294, %s694_s14   ;;  %s694_s14 = sphi %s721_s14, %s21_s14   ;;  %s690_s13 = sphi %s719_s13, %s892_s13   ;;  %s686_s12 = sphi %s717_s12, %s891_s12   ;;  %s682_s11 = sphi %s715_s11, %s890_s11   ;;  %s678_s10 = sphi %s713_s10, %s889_s10   ;;  %s674_s9 = sphi %s711_s9, %s888_s9  }
   0x9   : > { %s33_s17 = sadd.s32 1, %s690_s13  ;;  %s42_s18 = sadd.s32 1, %s682_s11 }
   0xa   : > { %p35_p0 = scmp.ge.s32.totalorder %s33_s17, 2  ;;  %p49_p1 = scmp.ne.s32.totalorder %s682_s11, %s678_s10 }
   0xb   : > { %p50_p2 = scmp.eq.s32.totalorder %s694_s14, 0  ;;  %p55_p3 = scmp.ne.s32.totalorder %s678_s10, %s674_s9 }
   0xc   : > { %s894_s17 = smov (%p35_p0, %s33_s17), 0  ;;  %p56_p5 = scmp.eq.s32.totalorder %s442_s15, 0 }
   0xd   : > { %p752_p4 = por %p50_p2, %p49_p1  ;;  %s39_s20 = ssub.s32 %s690_s13, %s894_s17 }
   0xe   : > { %p107_p6 = scmp.eq.s32.totalorder %s442_s15, 1  ;;  %p40_p7 = scmp.eq.s32.totalorder %s39_s20, 0 }
   0xf   : > { %p758_p8 = por %p56_p5, %p55_p3  ;;  %p113_p10 = scmp.eq.s32.totalorder %s443_s16, 1 }
  0x10   : > { %p762_p9 = por %p107_p6, %p49_p1  ;;  %p445_p12 = scmp.ge.s32.totalorder %s694_s14, 2 }
  0x11   : > { %s767_s23 = scalar_select %p40_p7, %s682_s11, %s42_s18  }
  0x12   : > { %p769_p11 = por %p113_p10, %p55_p3  ;;  %p481_p13 = scmp.lt.s32.totalorder %s694_s14, 2 }
  0x13   : > { %s133_s25 = sand.u32 1, %s682_s11   ;;  %s461_s27 = sshll.u32 %s690_s13, 5 }
  0x14   : > { %s446_s26 = sshll.u32 %s133_s25, 5  ;;  %s143_s30 = scalar_lea.hbm %s877_s0, %s461_s27 }
  0x15   : > { %s137_s3 = scalar_lea.vmem [#allocation2], %s446_s26  ;;  %s145_s5 = sshll.u32 %s143_s30, 4  ;;  %s146_s5 = int_to_ptr.hbm [resolvable:$true] %s145_s5 }
  0x16   : > { %s147_s4 = sshll.u32 %s137_s3, 4  ;;  %p471_p0 = pnand %p481_p13, %p752_p4  ;;  %s148_s4 = int_to_ptr.vmem [resolvable:$true] %s147_s4 }
  0x17   : > { %p452_p1 = scmp.ge.s32.totalorder %s694_s14, 1  ;;  %p173_p2 = scmp.lt.s32.totalorder %s694_s14, 3 }
  0x18   : > { %s134_s6 = scalar_lea.sflag [#allocation3], %s133_s25  ;;  %s164_s15 = scalar_lea.hbm %s878_s1, %s461_s27 }
  0x19   : > { %473 = dma.hbm_to_vmem [thread:$0]  (!%p471_p0), %s146_s5, 512, %s148_s4, %s134_s6  }
  0x1a   : > { %p174_p3 = pnand %p452_p1, %p173_p2  ;;  %s158_s16 = scalar_lea.vmem [#allocation5], %s446_s26 }
  0x1b   : > { %s168_s18 = sshll.u32 %s158_s16, 4  ;;  %s166_s20 = sshll.u32 %s164_s15, 4  ;;  %s169_s18 = int_to_ptr.vmem [resolvable:$true] %s168_s18  ;;  %s167_s20 = int_to_ptr.hbm [resolvable:$true] %s166_s20 }
  0x1c   : > { %s155_s28 = scalar_lea.sflag [#allocation6], %s133_s25  ;;  %177 = sbr.rel (%p174_p3) target bundleno = 70 (0x46), region = 28 }
  0x1d   : > { %476 = dma.hbm_to_vmem [thread:$0]  (!%p471_p0), %s167_s20, 512, %s169_s18, %s155_s28  }
  0x1e   : > { %s788_s19 = sand.u32 (!%p174_p3), 1, %s678_s10  }
  0x1f   : > { %s791_s29 = sshll.u32 (!%p174_p3), %s788_s19, 5  ;;  %s180_s30 = scalar_lea.sflag (!%p174_p3), [#allocation3], %s788_s19 }
  0x20   : > { %s183_s3 = scalar_lea.vmem (!%p174_p3), [#allocation2], %s791_s29 }
  0x21   : > { %661 = dma.done.wait (%p758_p8), %s180_s30, 512  }
  0x22   : > { %663 = vsyncadd (%p758_p8), %s180_s30, 4294966784  ;;  %s190_s25 = scalar_lea.sflag [#allocation6], %s788_s19  ;;  %s801_s26 = scalar_lea.vmem [#allocation5], %s791_s29 }
  0x23   : > { %665 = dma.done.wait (%p758_p8), %s190_s25, 512  }
  0x24   : > { %667 = vsyncadd (%p758_p8), %s190_s25, 4294966784  ;;  %v230_v0 = vld [vmem:[%s183_s3] sm:$0xff]  ;;  %v807_v1 = vld [vmem:[%s183_s3 + $0x8] sm:$0xff]  ;;  %s463_s21 = sshll.u32 %s686_s12, 5  ;;  %s219_s5 = scalar_lea.vmem [#allocation7], %s791_s29 }
  0x25   : > { %v250_v2 = vand.u32 2147483647, %v230_v0  ;;  %v809_v3 = vld [vmem:[%s183_s3 + $0x10] sm:$0xff]  ;;  %v251_v4 = vand.u32 2147483647, %v807_v1  ;;  %v813_v7 = vld [vmem:[%s183_s3 + $0x18] sm:$0xff]  ;;  %s334_s12 = scalar_lea.hbm %s879_s2, %s463_s21 }
  0x26   : > { %v252_v5 = vand.u32 2147483647, %v809_v3  ;;  %v253_v11 = vand.u32 2147483647, %v813_v7  ;;  %v234_v17 = vld [vmem:[%s801_s26] sm:$0xff]  ;;  %v238_v24 = vmax.f32 %v230_v0, 0.0 }
  0x27   : > { %v254_v6 = vsub.f32 0.0, %v250_v2  ;;  %v255_v8 = vsub.f32 0.0, %v251_v4  ;;  %v242_v25 = vmul.f32 %v234_v17, %v230_v0  ;;  %v235_v26 = vld [vmem:[%s801_s26 + $0x8] sm:$0xff]  ;;  %v239_v30 = vmax.f32 %v807_v1, 0.0  ;;  %v236_v31 = vld [vmem:[%s801_s26 + $0x10] sm:$0xff]  ;;  %v237_v39 = vld [vmem:[%s801_s26 + $0x18] sm:$0xff] }
  0x28   : > { %v256_v9 = vsub.f32 0.0, %v252_v5  ;;  %v257_v14 = vsub.f32 0.0, %v253_v11  ;;  %v243_v36 = vmul.f32 %v235_v26, %v807_v1  ;;  %v240_v41 = vmax.f32 %v809_v3, 0.0  ;;  %s336_s6 = sshll.u32 %s219_s5, 4  ;;  %s338_s7 = sshll.u32 %s334_s12, 4  ;;  %s337_s6 = int_to_ptr.vmem [resolvable:$true] %s336_s6  ;;  %s339_s7 = int_to_ptr.hbm [resolvable:$true] %s338_s7 }
  0x29   : > { %v258_v10 = vmul.f32 1.442695, %v254_v6  ;;  %v260_v12 = vmul.f32 1.442695, %v255_v8  ;;  %v244_v42 = vmul.f32 %v236_v31, %v809_v3  ;;  %v246_v44 = vsub.f32 %v238_v24, %v242_v25  ;;  %s323_s8 = scalar_lea.sflag [#allocation4], %s788_s19  ;;  %s622_s15 = sshra.s32 %s339_s7, 4  ;;  %s623_s15 = int_to_ptr.hbm [resolvable:$true] %s622_s15 }
  0x2a   : > { %v262_v13 = vmul.f32 1.442695, %v256_v9  ;;  %v264_v15 = vmul.f32 1.442695, %v257_v14  ;;  %v241_v46 = vmax.f32 %v813_v7, 0.0  ;;  %v245_v51 = vmul.f32 %v237_v39, %v813_v7  ;;  %s624_s16 = scalar_lea.hbm %s623_s15, 32  ;;  %p629_p7 = scmp.lt.s32.totalorder %s623_s15, %s879_s2 }
  0x2b   : > { %532 = vpow2.f32 %v258_v10  ;;  %v247_v55 = vsub.f32 %v239_v30, %v243_v36  ;;  %v248_v60 = vsub.f32 %v240_v41, %v244_v42  ;;  %p625_p4 = scmp.ne.s32.totalorder %s623_s15, %s624_s16  ;;  %s628_s28 = scalar_lea.hbm %s879_s2, 64 }
  0x2c   : > { %534 = vpow2.f32 %v260_v12  ;;  %v249_v3 = vsub.f32 %v241_v46, %v245_v51  ;;  %p630_p8 = scmp.lt.s32.totalorder %s628_s28, %s624_s16 }
  0x2d   : > { %536 = vpow2.f32 %v262_v13  ;;  %p626_p5 = pnand %p625_p4, %p762_p9 }
  0x2e   : > { %538 = vpow2.f32 %v264_v15  ;;  %p631_p10 = por %p630_p8, %p629_p7 }
  0x2f   : > { %p627_p6 = pneg %p626_p5 }
  0x31   : > { %v533_v16 = vpop.eup %532  ;;  %p632_p13 = pnand %p631_p10, %p627_p6 }
  0x32   : > { %v535_v18 = vpop.eup %534  ;;  %v266_v19 = vadd.f32 1.0, %v533_v16  ;;  %v269_v20 = vmul.f32 -0.5, %v533_v16  ;;  %v272_v33 = vand.u32 2147483647, %v533_v16 }
  0x33   : > { %v537_v21 = vpop.eup %536  ;;  %v275_v22 = vadd.f32 1.0, %v535_v18  ;;  %v278_v23 = vmul.f32 -0.5, %v535_v18  ;;  %v281_v37 = vand.u32 2147483647, %v535_v18 }
  0x34   : > { %540 = vlog2.f32 %v266_v19  ;;  %v284_v27 = vadd.f32 1.0, %v537_v21  ;;  %v539_v28 = vpop.eup %538  ;;  %v270_v29 = vadd.f32 1.0, %v269_v20  ;;  %v287_v32 = vmul.f32 -0.5, %v537_v21 }
  0x35   : > { %542 = vlog2.f32 %v275_v22  ;;  %v279_v34 = vadd.f32 1.0, %v278_v23  ;;  %v293_v35 = vadd.f32 1.0, %v539_v28  ;;  %v296_v40 = vmul.f32 -0.5, %v539_v28 }
  0x36   : > { %544 = vlog2.f32 %v284_v27  ;;  %v288_v38 = vadd.f32 1.0, %v287_v32  ;;  %v290_v43 = vand.u32 2147483647, %v537_v21  ;;  %v271_v45 = vmul.f32 %v533_v16, %v270_v29 }
  0x37   : > { %546 = vlog2.f32 %v293_v35  ;;  %v297_v47 = vadd.f32 1.0, %v296_v40  ;;  %vm825_vm0 = vcmp.lt.f32.partialorder %v272_v33, 0.0004427343  ;;  %v280_v50 = vmul.f32 %v535_v18, %v279_v34 }
  0x38   : > { %v299_v52 = vand.u32 2147483647, %v539_v28  ;;  %vm830_vm1 = vcmp.lt.f32.partialorder %v281_v37, 0.0004427343  ;;  %v289_v57 = vmul.f32 %v537_v21, %v288_v38  ;;  %vm291_vm2 = vcmp.lt.f32.partialorder %v290_v43, 0.0004427343 }
  0x39   : > { %v298_v63 = vmul.f32 %v539_v28, %v297_v47 }
  0x3a   : > { %v541_v48 = vpop.eup %540  ;;  %vm300_vm3 = vcmp.lt.f32.partialorder %v299_v52, 0.0004427343 }
  0x3b   : > { %v543_v53 = vpop.eup %542  ;;  %v268_v54 = vmul.f32 0.6931472, %v541_v48 }
  0x3c   : > { %v545_v58 = vpop.eup %544  ;;  %v277_v59 = vmul.f32 0.6931472, %v543_v53 }
  0x3d   : > { %v274_v61 = vsel %vm825_vm0, %v271_v45, %v268_v54  ;;  %v286_v62 = vmul.f32 0.6931472, %v545_v58  ;;  %v547_v0 = vpop.eup %546 }
  0x3e   : > { %v302_v1 = vadd.f32 %v274_v61, %v246_v44  ;;  %v283_v2 = vsel %vm830_vm1, %v280_v50, %v277_v59  ;;  %v295_v6 = vmul.f32 0.6931472, %v547_v0 }
  0x3f   : > { %v303_v4 = vadd.f32 %v283_v2, %v247_v55  ;;  %v292_v5 = vsel %vm291_vm2, %v289_v57, %v286_v62 }
  0x40   : > { %v304_v7 = vadd.f32 %v292_v5, %v248_v60  ;;  %v301_v8 = vsel %vm300_vm3, %v298_v63, %v295_v6  ;;  %318 = vst [vmem:[%s219_s5] sm:$0xff] %v302_v1 }
  0x41   : > { %v305_v9 = vadd.f32 %v301_v8, %v249_v3  ;;  %319 = vst [vmem:[%s219_s5 + $0x8] sm:$0xff] %v303_v4 }
  0x42   : > { %320 = vst [vmem:[%s219_s5 + $0x10] sm:$0xff] %v304_v7 }
  0x43   : > { %321 = vst [vmem:[%s219_s5 + $0x18] sm:$0xff] %v305_v9 }
  0x44   : > { %635 = shalt.err (!%p632_p13)
}
  0x45   : > { %468 = dma.vmem_to_hbm [thread:$0]  (%p762_p9), %s337_s6, 512, %s339_s7, %s323_s8  }
  0x46 PF: > { %s350_s19 = sand.u32 1, %s674_s9   ;;  %p478_p0 = pnand %p445_p12, %p769_p11 }
  0x47   : > { %s351_s3 = scalar_lea.sflag [#allocation4], %s350_s19 }
  0x48   : > { %p479_p1 = pneg %p478_p0 }
  0x4a   : > { %669 = dma.done.wait (%p479_p1), %s351_s3, 512  }
  0x4b   : > { %671 = vsyncadd (%p479_p1), %s351_s3, 4294966784  ;;  %s21_s14 = sadd.s32 1, %s694_s14   ;;  %s888_s9 = smov %s678_s10 }
  0x4c   : > { %p18_p2 = scmp.ge.s32.totalorder %s21_s14, 4   ;;  %s889_s10 = smov %s682_s11 }
  0x4d   : > { %s890_s11 = smov %s767_s23  ;;  %s891_s12 = smov %s690_s13 }
  0x4e   : > { %s892_s13 = smov %s894_s17  ;;  %20 = sbr.rel (!%p18_p2) target bundleno = 8 (0x8), region = 90 }
  0x53   :  { %357 = vsyncpa [#allocation3], 1 }
  0x54   :  { %359 = vsyncpa [#allocation3 + $0x1], 1 }
  0x55   :  { %360 = vsyncpa [#allocation6], 1 }
  0x56   :  { %362 = vsyncpa [#allocation6 + $0x1], 1 }
  0x57   :  { %363 = vsyncpa [#allocation4], 1 }
  0x58   :  { %365 = vsyncpa [#allocation4 + $0x1], 1 }

</bundles_post_ra>
